<compile_context>
chip_gen: v7x
topology: tpu7x:2x2x1
jax: 0.10.0
libtpu: 0.0.40
codegen_flags: <defaults>
</compile_context>

<pallas_src>
import functools

import jax
import jax.numpy as jnp
from jax.experimental import pallas as pl
from jax.experimental.pallas import tpu as pltpu


_TILE_BUDGET = 8 * 1024 * 1024    # bytes of L^T per grid step (double-buffered)
_VMEM_LIMIT = 48 * 1024 * 1024    # < v7x 64 MiB physical; ample on v5e/v6e


def _round_up(x, m):
    return ((x + m - 1) // m) * m


# ----------------------------- glue (plain JAX) -----------------------------
def uniform_laplacian_matrix(faces, num_point):
    """Dense uniform Laplacian L = D^{-1} A - I from faces (F, Lf) int32.
    Used only by the pure-JAX reference."""
    Lf = faces.shape[1]
    src = jnp.concatenate([faces[:, k] for k in range(Lf)])
    dst = jnp.concatenate([faces[:, (k + 1) % Lf] for k in range(Lf)])
    A = jnp.zeros((num_point, num_point), jnp.float32)
    A = A.at[src, dst].set(1.0)
    A = A.at[dst, src].set(1.0)
    A = A * (1.0 - jnp.eye(num_point, dtype=jnp.float32))  # drop self-edges
    deg = jnp.sum(A, axis=-1, keepdims=True)
    inv_deg = jnp.where(deg > 0, 1.0 / jnp.maximum(deg, 1.0), 0.0)
    diag = jnp.diag((deg[:, 0] > 0).astype(jnp.float32))
    return A * inv_deg - diag  # isolated vertices -> zero row


def uniform_laplacian_matrix_T(faces, num_point, n_pad=None, dtype=jnp.float32):
    """Build L^T directly (in `dtype`, optionally zero-padded to n_pad).

    A is symmetric, so L^T = (D^{-1} A - I)^T = A * inv_deg[None, :] - diag
    (column scaling).  Building L^T + the streaming-dtype cast here avoids a
    separate transpose/cast pass over the N^2 operand in the loss wrapper.
    Padded rows/cols (vertices with no faces) are exactly zero.
    """
    Lf = faces.shape[1]
    n = num_point if n_pad is None else n_pad
    src = jnp.concatenate([faces[:, k] for k in range(Lf)])
    dst = jnp.concatenate([faces[:, (k + 1) % Lf] for k in range(Lf)])
    A = jnp.zeros((n, n), jnp.float32)
    A = A.at[src, dst].set(1.0)
    A = A.at[dst, src].set(1.0)
    A = A * (1.0 - jnp.eye(n, dtype=jnp.float32))           # drop self-edges
    deg = jnp.sum(A, axis=-1)                                # (n,)
    inv_deg = jnp.where(deg > 0, 1.0 / jnp.maximum(deg, 1.0), 0.0)
    diag = jnp.diag((deg > 0).astype(jnp.float32))
    lapT = A * inv_deg[None, :] - diag                       # column-scaled
    return lapT.astype(dtype)


def _pick_tiles(B, Np, itemsize, tile_budget, max_bb=16):
    """Choose (batches-per-step bb, contraction tile tk)."""
    per_batch = Np * Np * itemsize
    if per_batch <= tile_budget:
        # Small mesh: batch several per step to amortize ~0.35us/step, but
        # keep grid_b >= 2 when B >= 2 so both v7x TensorCores get work.
        bb_cap = max(1, min(max_bb, B // 2 if B >= 2 else 1))
        bb = 1
        for cand in range(bb_cap, 0, -1):
            if B % cand == 0 and cand * per_batch <= tile_budget:
                bb = cand
                break
        return bb, Np
    # Large mesh: tile the contraction (sublane) axis with full lane width Np
    # -> fully contiguous rows per DMA.  Requires Np % 128 == 0 (wrapper pads).
    if Np % 128 != 0:
        return 1, Np  # fallback (wrapper pads before reaching here)
    n_units = Np // 128
    tk = 128
    for m in range(1, n_units + 1):
        if n_units % m == 0 and (128 * m) * Np * itemsize <= tile_budget:
            tk = 128 * m
    return 1, tk


# ------------------------------ Pallas kernel -------------------------------
def _mesh_lap_loss_kernel(lapT_ref, dvT_ref, out_ref, acc_ref, *, bb):
    # Grid: (batch-group, contraction k-tile). k is a reduction axis.
    k = pl.program_id(1)

    @pl.when(k == 0)
    def _():
        acc_ref[...] = jnp.zeros_like(acc_ref)

    # Partial contraction, lane-dense on Np:
    #   acc[b] += dv[b]^T[:, k-tile] @ L[b]^T[k-tile, :]   -> (D, Np) f32
    for b in range(bb):  # static unroll; bb <= 16 by construction
        acc_ref[b, :, :] = acc_ref[b, :, :] + jnp.dot(
            dvT_ref[b], lapT_ref[b], preferred_element_type=jnp.float32)

    @pl.when(k == pl.num_programs(1) - 1)
    def _():
        # abs only after the full contraction; one XLU reduction per group.
        out_ref[...] = jnp.sum(jnp.abs(acc_ref[...])).reshape(out_ref.shape)


def mesh_laplacian_loss(lapT, vert1, vert2, *, tile_budget=_TILE_BUDGET):
    """lapT: (B, Np, Np) pre-transposed uniform Laplacian (f32 or bf16; rows /
    cols beyond the real vertex count must be zero).  vert1/vert2: (B, N, D)
    f32 with N <= Np.  Returns mean |L (v1 - v2)| over B*N*D elements, which
    equals L1Loss(L v1, L v2)."""
    B, N, D = vert1.shape
    assert vert2.shape == vert1.shape
    assert lapT.shape[0] == B and lapT.shape[1] == lapT.shape[2]
    Np = lapT.shape[-1]
    assert Np >= N
    itemsize = jnp.dtype(lapT.dtype).itemsize

    # Pad the Laplacian to a multiple of 128 only when contraction tiling is
    # required and it is not already lane-aligned (zero pad: numerically
    # neutral, mean divisor stays B*N*D).
    if Np % 128 != 0 and Np * Np * itemsize > tile_budget:
        np_new = _round_up(Np, 128)
        lapT = jnp.pad(lapT, ((0, 0), (0, np_new - Np), (0, np_new - Np)))
        Np = np_new

    # dv = v1 - v2 once (linearity); lane-dense (B, D, Np), matmul dtype.
    dvT = jnp.swapaxes(vert1 - vert2, -1, -2)                 # (B, D, N) f32
    if Np > N:
        dvT = jnp.pad(dvT, ((0, 0), (0, 0), (0, Np - N)))
    dvT = dvT.astype(lapT.dtype)

    bb, tk = _pick_tiles(B, Np, itemsize, tile_budget)
    grid_b = B // bb
    grid_k = Np // tk

    kernel = functools.partial(_mesh_lap_loss_kernel, bb=bb)
    partials = pl.pallas_call(
        kernel,
        out_shape=jax.ShapeDtypeStruct((grid_b, 1, 1), jnp.float32),
        grid_spec=pltpu.PrefetchScalarGridSpec(
            num_scalar_prefetch=0,
            grid=(grid_b, grid_k),
            in_specs=[
                # L^T k-tile with FULL lane width: contiguous-row DMAs.
                pl.BlockSpec((bb, tk, Np), lambda b, k: (b, k, 0)),
                # matching dv^T k-slice (tiny).
                pl.BlockSpec((bb, D, tk), lambda b, k: (b, 0, k)),
            ],
            out_specs=pl.BlockSpec((1, 1, 1), lambda b, k: (b, 0, 0)),
            scratch_shapes=[pltpu.VMEM((bb, D, Np), jnp.float32)],
        ),
        compiler_params=pltpu.CompilerParams(
            dimension_semantics=("parallel", "arbitrary"),
            vmem_limit_bytes=_VMEM_LIMIT,
        ),
    )(lapT, dvT)

    # Final mean (L1Loss, mean reduction) over the original B*N*D elements.
    return jnp.sum(partials) * (1.0 / float(B * N * D))


# ------------------------------ reference (JAX) ------------------------------
def mesh_laplacian_loss_ref(lap, vert1, vert2):
    l1 = jnp.einsum("bij,bjd->bid", lap, vert1, precision="highest")
    l2 = jnp.einsum("bij,bjd->bid", lap, vert2, precision="highest")
    return jnp.mean(jnp.abs(l1 - l2))


# ---------------------------------- main -------------------------------------
if __name__ == "__main__":
    root_key = jax.random.PRNGKey(0)

    def make_inputs(key, B, N, D):
        F = N - 2  # triangle-strip mesh: face f = (f, f+1, f+2)
        base_faces = jnp.stack(
            [jnp.arange(F), jnp.arange(F) + 1, jnp.arange(F) + 2], axis=-1
        ).astype(jnp.int32)                                  # (F, 3)
        faces = jnp.broadcast_to(base_faces, (B, F, 3))      # (B, F, 3)
        k1, k2 = jax.random.split(key)
        v1 = jax.random.normal(k1, (B, N, D), dtype=jnp.float32)
        v2 = jax.random.normal(k2, (B, N, D), dtype=jnp.float32)
        return faces, v1, v2

    key1, key2, key3 = jax.random.split(root_key, 3)

    # ---- case 1: small mesh, B=2 (grid_b=2 keeps both v7x TCs busy) --------
    B, N, D = 2, 64, 3
    faces, v1, v2 = make_inputs(key1, B, N, D)
    n_pad = _round_up(N, 128)
    lap_ref = jax.vmap(lambda f: uniform_laplacian_matrix(f, N))(faces)
    ref = jax.block_until_ready(mesh_laplacian_loss_ref(lap_ref, v1, v2))

    lapT32 = jax.vmap(
        lambda f: uniform_laplacian_matrix_T(f, N, n_pad, jnp.float32))(faces)
    out32 = jax.block_until_ready(mesh_laplacian_loss(lapT32, v1, v2))
    assert jnp.allclose(out32, ref, rtol=1e-4, atol=1e-5), (out32, ref)

    # bf16 Laplacian stream (halves the dominant HBM operand; ~0.3-1% rel err).
    lapT16 = jax.vmap(
        lambda f: uniform_laplacian_matrix_T(f, N, n_pad, jnp.bfloat16))(faces)
    out16 = jax.block_until_ready(mesh_laplacian_loss(lapT16, v1, v2))
    assert jnp.allclose(out16, ref, rtol=5e-3, atol=1e-4), (out16, ref)

    # ---- case 2: many small meshes -> bb > 1 batching path -----------------
    B2, N2 = 8, 64
    faces2, v1b, v2b = make_inputs(key2, B2, N2, D)
    lap_ref2 = jax.vmap(lambda f: uniform_laplacian_matrix(f, N2))(faces2)
    ref2 = jax.block_until_ready(mesh_laplacian_loss_ref(lap_ref2, v1b, v2b))
    lapT2 = jax.vmap(
        lambda f: uniform_laplacian_matrix_T(f, N2, _round_up(N2, 128),
                                             jnp.bfloat16))(faces2)
    out2 = jax.block_until_ready(mesh_laplacian_loss(lapT2, v1b, v2b))
    assert jnp.allclose(out2, ref2, rtol=5e-3, atol=1e-4), (out2, ref2)

    # ---- case 3: non-128-aligned N + forced contraction tiling -------------
    B3, N3 = 2, 250
    faces3, v1c, v2c = make_inputs(key3, B3, N3, D)
    lap_ref3 = jax.vmap(lambda f: uniform_laplacian_matrix(f, N3))(faces3)
    ref3 = jax.block_until_ready(mesh_laplacian_loss_ref(lap_ref3, v1c, v2c))
    lapT3 = jax.vmap(
        lambda f: uniform_laplacian_matrix_T(f, N3, _round_up(N3, 128),
                                             jnp.float32))(faces3)
    # tiny tile budget forces grid_k > 1 (exercises the k-accumulation path)
    out3 = jax.block_until_ready(
        mesh_laplacian_loss(lapT3, v1c, v2c, tile_budget=100 * 1024))
    assert jnp.allclose(out3, ref3, rtol=1e-4, atol=1e-5), (out3, ref3)

    print("KERNEL_OK")
</pallas_src>

<mosaic_0001>
module attributes {stable_mosaic.version = 11 : i64} {
  func.func @_mesh_lap_loss_kernel(%arg0: i32, %arg1: i32, %arg2: memref<1x128x128xf32, #tpu.memory_space<vmem>>, %arg3: memref<1x3x128xf32, #tpu.memory_space<vmem>>, %arg4: memref<1x1x1xf32, #tpu.memory_space<vmem>>, %arg5: memref<1x3x128xf32, #tpu.memory_space<vmem>>) attributes {dimension_semantics = [#tpu.dimension_semantics<parallel>, #tpu.dimension_semantics<arbitrary>], iteration_bounds = array<i64: 2, 1>, scalar_prefetch = 0 : i64, scratch_operands = 1 : i64, tpu.core_type = #tpu.core_type<tc>, window_params = [{transform_indices = @transform_0, window_bounds = array<i64: 1, 128, 128>}, {transform_indices = @transform_1, window_bounds = array<i64: 1, 3, 128>}, {transform_indices = @transform_2, window_bounds = array<i64: 1, 1, 1>}]} {
    %c0_i32 = arith.constant 0 : i32
    %0 = arith.cmpi eq, %arg1, %c0_i32 : i32
    %1 = arith.extui %0 : i1 to i32
    %c0_i32_0 = arith.constant 0 : i32
    %2 = arith.cmpi ne, %1, %c0_i32_0 : i32
    scf.if %2 {
      %cst_14 = arith.constant 0.000000e+00 : f32
      %17 = vector.broadcast %cst_14 : f32 to vector<1x3x128xf32>
      %c0_15 = arith.constant 0 : index
      %c0_16 = arith.constant 0 : index
      %c0_17 = arith.constant 0 : index
      %18 = vector.load %arg5[%c0_15, %c0_16, %c0_17] : memref<1x3x128xf32, #tpu.memory_space<vmem>>, vector<1x3x128xf32>
      tpu.vector_store %arg5[%c0_15, %c0_16, %c0_17], %17 {strides = array<i32>} : memref<1x3x128xf32, #tpu.memory_space<vmem>>, vector<1x3x128xf32>,
    } else {
    }
    %c0 = arith.constant 0 : index
    %c0_1 = arith.constant 0 : index
    %c0_2 = arith.constant 0 : index
    %3 = vector.load %arg5[%c0, %c0_1, %c0_2] : memref<1x3x128xf32, #tpu.memory_space<vmem>>, vector<1x3x128xf32>
    %4 = vector.shape_cast %3 : vector<1x3x128xf32> to vector<3x128xf32>
    %c0_3 = arith.constant 0 : index
    %c0_4 = arith.constant 0 : index
    %c0_5 = arith.constant 0 : index
    %5 = vector.load %arg3[%c0_3, %c0_4, %c0_5] : memref<1x3x128xf32, #tpu.memory_space<vmem>>, vector<1x3x128xf32>
    %6 = vector.shape_cast %5 : vector<1x3x128xf32> to vector<3x128xf32>
    %c0_6 = arith.constant 0 : index
    %c0_7 = arith.constant 0 : index
    %c0_8 = arith.constant 0 : index
    %7 = vector.load %arg2[%c0_6, %c0_7, %c0_8] : memref<1x128x128xf32, #tpu.memory_space<vmem>>, vector<1x128x128xf32>
    %8 = vector.shape_cast %7 : vector<1x128x128xf32> to vector<128x128xf32>
    %cst = arith.constant dense<0.000000e+00> : vector<3x128xf32>
    %9 = tpu.matmul %6, %8, %cst {dimension_numbers = #tpu.dot_dimension_numbers<[1], [0], [0], [1], [0, 0, 1, 1], [], []>} : vector<3x128xf32>, vector<128x128xf32>, vector<3x128xf32> -> vector<3x128xf32>
    %10 = arith.addf %4, %9 : vector<3x128xf32>
    %c0_9 = arith.constant 0 : index
    %c0_10 = arith.constant 0 : index
    %c0_11 = arith.constant 0 : index
    %11 = vector.load %arg5[%c0_9, %c0_10, %c0_11] : memref<1x3x128xf32, #tpu.memory_space<vmem>>, vector<1x3x128xf32>
    %12 = vector.shape_cast %11 : vector<1x3x128xf32> to vector<3x128xf32>
    %13 = vector.shape_cast %10 : vector<3x128xf32> to vector<1x3x128xf32>
    tpu.vector_store %arg5[%c0_9, %c0_10, %c0_11], %13 {strides = array<i32>} : memref<1x3x128xf32, #tpu.memory_space<vmem>>, vector<1x3x128xf32>,
    %c0_i32_12 = arith.constant 0 : i32
    %14 = arith.cmpi eq, %arg1, %c0_i32_12 : i32
    %15 = arith.extui %14 : i1 to i32
    %c0_i32_13 = arith.constant 0 : i32
    %16 = arith.cmpi ne, %15, %c0_i32_13 : i32
    scf.if %16 {
      %c0_14 = arith.constant 0 : index
      %c0_15 = arith.constant 0 : index
      %c0_16 = arith.constant 0 : index
      %17 = vector.load %arg5[%c0_14, %c0_15, %c0_16] : memref<1x3x128xf32, #tpu.memory_space<vmem>>, vector<1x3x128xf32>
      %18 = math.absf %17 : vector<1x3x128xf32>
      %19 = vector.shape_cast %18 : vector<1x3x128xf32> to vector<1x1x3x128xf32>
      %cst_17 = arith.constant dense<0.000000e+00> : vector<1xf32>
      %20 = vector.multi_reduction <add>, %19, %cst_17 [1, 2, 3] : vector<1x1x3x128xf32> to vector<1xf32>
      %21 = vector.shape_cast %20 : vector<1xf32> to vector<1x1x1x1xf32>
      %22 = vector.extract %21[0, 0, 0, 0] : f32 from vector<1x1x1x1xf32>
      %23 = vector.broadcast %22 : f32 to vector<1x1x1xf32>
      %c0_18 = arith.constant 0 : index
      %c0_19 = arith.constant 0 : index
      %c0_20 = arith.constant 0 : index
      %24 = vector.load %arg4[%c0_18, %c0_19, %c0_20] : memref<1x1x1xf32, #tpu.memory_space<vmem>>, vector<1x1x1xf32>
      tpu.vector_store %arg4[%c0_18, %c0_19, %c0_20], %23 {strides = array<i32>} : memref<1x1x1xf32, #tpu.memory_space<vmem>>, vector<1x1x1xf32>,
    } else {
    }
    return
  }
  func.func @transform_0(%arg0: i32, %arg1: i32) -> (i32, i32, i32) {
    %c0_i32 = arith.constant 0 : i32
    %c0_i32_0 = arith.constant 0 : i32
    return %arg0, %arg1, %c0_i32 : i32, i32, i32
  }
  func.func @transform_1(%arg0: i32, %arg1: i32) -> (i32, i32, i32) {
    %c0_i32 = arith.constant 0 : i32
    %c0_i32_0 = arith.constant 0 : i32
    return %arg0, %c0_i32, %arg1 : i32, i32, i32
  }
  func.func @transform_2(%arg0: i32, %arg1: i32) -> (i32, i32, i32) {
    %c0_i32 = arith.constant 0 : i32
    %c0_i32_0 = arith.constant 0 : i32
    %c0_i32_1 = arith.constant 0 : i32
    return %arg0, %c0_i32, %c0_i32_0 : i32, i32, i32
  }
}

</mosaic_0001>

<bundles_post_ra>
// kernel: tpu_custom_call.1
= control target key start
LH: loop header
LB: loop body
LE: loop exit
PB: predicated region body
PF: predicated region fallthrough
CT: control target
= control target key end

     0   :  { %7 = vsyncpa [#allocation4], 0  ;;  %s807_s0 = inlined_call_operand.hbm [shape: f32[2,128,128], index: 0, kind: input, shape index: {}]   ;;  %s808_s1 = inlined_call_operand.vmem [shape: f32[2,3,128], index: 1, kind: input, shape index: {}]   ;;  %s809_s2 = inlined_call_operand.vmem [shape: f32[2,1,1], index: 2, kind: output, shape index: {}]  }
   0x1   :  { %9 = vsyncpa [#allocation4 + $0x1], 0  ;;  %s658_s9 = smov 0   ;;  %s660_s10 = smov 0  }
   0x2   :  { %s662_s11 = smov 0   ;;  %s664_s12 = smov 0  }
   0x3   :  { %s666_s13 = smov 0   ;;  %s668_s14 = smov 0  }
   0x4 LB: > { %s404_s15 = sadd.s32 4294967295, %s635_s14   ;;  %s27_s16 = sadd.s32 1, %s631_s13  ;;  %s635_s14 = sphi %s668_s14, %s15_s14   ;;  %s631_s13 = sphi %s666_s13, %s817_s13   ;;  %s627_s12 = sphi %s664_s12, %s816_s12   ;;  %s623_s11 = sphi %s662_s11, %s815_s11   ;;  %s619_s10 = sphi %s660_s10, %s814_s10   ;;  %s615_s9 = sphi %s658_s9, %s813_s9  }
   0x5   : > { %p29_p0 = scmp.ge.s32.totalorder %s27_s16, 2  ;;  %s36_s17 = sadd.s32 1, %s623_s11 }
   0x6   : > { %p43_p1 = scmp.ne.s32.totalorder %s623_s11, %s619_s10  ;;  %p44_p2 = scmp.eq.s32.totalorder %s635_s14, 0 }
   0x7   : > { %s819_s16 = smov (%p29_p0, %s27_s16), 0  ;;  %p49_p4 = scmp.ne.s32.totalorder %s619_s10, %s615_s9 }
   0x8   : > { %p694_p3 = por %p44_p2, %p43_p1  ;;  %s31_s19 = ssub.s32 %s631_s13, %s819_s16 }
   0x9   : > { %p50_p5 = scmp.eq.s32.totalorder %s404_s15, 0  ;;  %p34_p6 = scmp.eq.s32.totalorder %s31_s19, 0 }
   0xa   : > { %p501_p8 = scmp.lt.s32.totalorder %s635_s14, 2  ;;  %s127_s22 = sand.u32 1, %s623_s11  }
   0xb   : > { %p701_p7 = por %p50_p5, %p49_p4  ;;  %s416_s23 = sshll.u32 %s631_s13, 11 }
   0xc   : > { %s707_s21 = scalar_select %p34_p6, %s623_s11, %s36_s17  }
   0xd   : > { %s408_s24 = sshll.u32 %s127_s22, 7  ;;  %s714_s27 = scalar_lea.hbm %s807_s0, %s416_s23 }
   0xe   : > { %s131_s28 = scalar_lea.vmem [#allocation3], %s408_s24  ;;  %p718_p9 = pnand %p501_p8, %p694_p3 }
   0xf   : > { %s140_s29 = sshll.u32 %s131_s28, 4  ;;  %s724_s3 = scalar_lea.sflag [#allocation4], %s127_s22  ;;  %s722_s29 = int_to_ptr.vmem [resolvable:$true] %s140_s29 }
  0x10   : > { %s555_s4 = scalar_lea.hbm %s714_s27, 2048  ;;  %p557_p11 = pneg %p718_p9 }
  0x11   : > { %p556_p10 = scmp.ne.s32.totalorder %s714_s27, %s555_s4  ;;  %s560_s7 = scalar_lea.hbm %s807_s0, 4096 }
  0x12   : > { %p561_p0 = scmp.lt.u32.totalorder %s714_s27, %s807_s0  ;;  %p562_p1 = scmp.lt.u32.totalorder %s560_s7, %s555_s4 }
  0x13   : > { %p558_p12 = pnand %p557_p11, %p556_p10  ;;  %p564_p3 = scmp.lt.u32.totalorder %s555_s4, %s714_s27 }
  0x14   : > { %p563_p2 = por %p562_p1, %p561_p0 }
  0x15   : > { %p559_p13 = pneg %p558_p12 }
  0x16   : > { %p565_p4 = por %p564_p3, %p563_p2 }
  0x18   : > { %p566_p5 = pnand %p565_p4, %p559_p13 }
  0x1a   : > { %569 = shalt.err (!%p566_p5)
}
  0x1b   : > { %s570_s15 = scalar_lea.vmem %s722_s29, 2048  ;;  %s637_s17 = smov [#allocation3]  }
  0x1c   : > { %p571_p6 = scmp.ne.s32.totalorder %s722_s29, %s570_s15  ;;  %s575_s18 = sshll.u32 %s637_s17, 4  ;;  %s576_s18 = int_to_ptr.vmem [resolvable:$false] %s575_s18 }
  0x1d   : > { %s577_s19 = scalar_lea.vmem %s576_s18, 4096  ;;  %p578_p12 = scmp.lt.s32.totalorder %s722_s29, %s576_s18 }
  0x1e   : > { %p573_p8 = pnand %p571_p6, %p557_p11  ;;  %p579_p0 = scmp.lt.s32.totalorder %s577_s19, %s570_s15 }
  0x20   : > { %p574_p10 = pneg %p573_p8  ;;  %p580_p1 = por %p579_p0, %p578_p12 }
  0x22   : > { %p581_p2 = pnand %p580_p1, %p574_p10 }
  0x24   : > { %584 = shalt.err (!%p581_p2)
}
  0x25   : > { %s638_s22 = smov 128   ;;  %s639_s23 = smov 8  }
  0x26   : > { %500 = dma.hbm_to_vmem [thread:$0]  (!%p718_p9), %s714_s27, 2048, %s722_s29, %s724_s3, %s638_s22, %s638_s22, %s639_s23  }
  0x27   : > { %p411_p11 = scmp.ge.s32.totalorder %s635_s14, 1  ;;  %p158_p13 = scmp.lt.s32.totalorder %s635_s14, 3 }
  0x29   : > { %p159_p3 = pnand %p411_p11, %p158_p13 }
  0x2a   : > { %s164_s24 = sand.u32 (!%p159_p3), 1, %s619_s10  }
  0x2b   : > { %162 = sbr.rel (%p159_p3) target bundleno = 516 (0x204), region = 28  ;;  %s412_s25 = sshll.u32 (!%p159_p3), %s164_s24, 7 }
  0x2c   : > { %s165_s26 = scalar_lea.sflag (!%p159_p3), [#allocation4], %s164_s24  ;;  %s755_s28 = scalar_lea.vmem (!%p159_p3), [#allocation3], %s412_s25 }
  0x32   : > { %610 = dma.done.wait (%p701_p7), %s165_s26, 2048  }
  0x33   : > { %612 = vsyncadd (%p701_p7), %s165_s26, 4294965248  ;;  %v640_v0 = vmov 0.0|0.0   ;;  %v641_v1 = vmov 0.0   ;;  %vm642_vm0 = vmmov 0   ;;  %v212_v2 = vld [vmem:[%s755_s28] sm:$0xff]  ;;  %v213_v3 = vld [vmem:[%s755_s28 + $0x8] sm:$0xff] }
  0x34   : > { %469 = vmatprep.subr.bf16.mxu0 %v640_v0  ;;  %209 = vst [vmem:[#allocation2] sm:$0x7] %v641_v1  ;;  %466 = vmatprep.mubr.msk.f32.mxu0 %vm642_vm0, %v641_v1  ;;  %v214_v4 = vld [vmem:[%s755_s28 + $0x10] sm:$0xff]  ;;  %v470_v5 = vpack.c.bf16 %v213_v3, %v212_v2  ;;  %v215_v6 = vld [vmem:[%s755_s28 + $0x18] sm:$0xff]  ;;  %v216_v8 = vld [vmem:[%s755_s28 + $0x20] sm:$0xff]  ;;  %p195_p7 = scmp.lt.s32.totalorder %s627_s12, 1 }
  0x35   : > { %v473_v7 = vpack.c.bf16 %v215_v6, %v214_v4  ;;  %v217_v9 = vld [vmem:[%s755_s28 + $0x28] sm:$0xff]  ;;  %v218_v11 = vld [vmem:[%s755_s28 + $0x30] sm:$0xff]  ;;  %v219_v12 = vld [vmem:[%s755_s28 + $0x38] sm:$0xff]  ;;  %vm305_vm1 = vcmask 1042432   ;;  %vm317_vm2 = vcmask 0  }
  0x36   : > { %471 = vmatpush3.bf16.msra.mxu0 %v470_v5  ;;  %v476_v10 = vpack.c.bf16 %v217_v9, %v216_v8  ;;  %v479_v13 = vpack.c.bf16 %v219_v12, %v218_v11  ;;  %v220_v14 = vld [vmem:[%s755_s28 + $0x40] sm:$0xff]  ;;  %v221_v15 = vld [vmem:[%s755_s28 + $0x48] sm:$0xff]  ;;  %v222_v17 = vld [vmem:[%s755_s28 + $0x50] sm:$0xff]  ;;  %s821_s12 = smov (!%p195_p7, %s627_s12), 1 }
  0x37   : > { %472 = vmatprep.subr.bf16.mxu0 %v640_v0  ;;  %v482_v16 = vpack.c.bf16 %v221_v15, %v220_v14  ;;  %v223_v18 = vld [vmem:[%s755_s28 + $0x58] sm:$0xff]  ;;  %v224_v20 = vld [vmem:[%s755_s28 + $0x60] sm:$0xff]  ;;  %v225_v21 = vld [vmem:[%s755_s28 + $0x68] sm:$0xff]  ;;  %s413_s20 = sshll.u32 %s821_s12, 2  ;;  %s204_s5 = scalar_lea.vmem %s809_s2, %s821_s12 }
  0x38   : > { %v485_v19 = vpack.c.bf16 %v223_v18, %v222_v17  ;;  %v488_v22 = vpack.c.bf16 %v225_v21, %v224_v20  ;;  %v226_v23 = vld [vmem:[%s755_s28 + $0x70] sm:$0xff]  ;;  %v227_v24 = vld [vmem:[%s755_s28 + $0x78] sm:$0xff]  ;;  %s201_s30 = scalar_lea.vmem %s808_s1, %s413_s20 }
  0x39   : > { %v491_v25 = vpack.c.bf16 %v227_v24, %v226_v23  ;;  %v211_v26 = vld [vmem:[%s201_s30] sm:$0x7] }
  0x3a   : > { %474 = vmatpush3.bf16.msra.mxu0 %v473_v7 }
  0x3b   : > { %475 = vmatprep.subr.bf16.mxu0 %v640_v0  ;;  %v210_v27 = vld [vmem:[#allocation2] sm:$0x7] }
  0x3e   : > { %477 = vmatpush3.bf16.msra.mxu0 %v476_v10 }
  0x3f   : > { %478 = vmatprep.subr.bf16.mxu0 %v640_v0 }
  0x42   : > { %480 = vmatpush3.bf16.msra.mxu0 %v479_v13 }
  0x43   : > { %481 = vmatprep.subr.bf16.mxu0 %v640_v0 }
  0x46   : > { %483 = vmatpush3.bf16.msra.mxu0 %v482_v16 }
  0x47   : > { %484 = vmatprep.subr.bf16.mxu0 %v640_v0 }
  0x4a   : > { %486 = vmatpush3.bf16.msra.mxu0 %v485_v19 }
  0x4b   : > { %487 = vmatprep.subr.bf16.mxu0 %v640_v0 }
  0x4e   : > { %489 = vmatpush3.bf16.msra.mxu0 %v488_v22 }
  0x4f   : > { %490 = vmatprep.subr.bf16.mxu0 %v640_v0 }
  0x52   : > { %492 = vmatpush3.bf16.msra.mxu0 %v491_v25 }
  0x55   : > { %467 = vmatmul.mubr.f32.vlgmr.msra.gmra.mrb[0].mxu0 %v211_v26 }
 0x128   : > { %v294_v28 = vpop.f32.mrb[0].mxu0 }
 0x129   : > { %v298_v29 = vadd.f32 %v294_v28, %v210_v27  ;;  %v468_v30 = vpop.f32.mrb[1].mxu0 }
 0x12b   : > { %299 = vst [vmem:[#allocation2] sm:$0x7] %v298_v29 }
 0x132   : > { %v303_v31 = vld [vmem:[#allocation2] sm:$0x7] }
 0x133   : > { %v304_v32 = vand.u32 2147483647, %v303_v31 }
 0x135   : > { %v306_v33 = vsel %vm305_vm1, %v304_v32, 0.0 }
 0x136   : > { %307 = vadd.xlane.f32.xlu0 %v306_v33 }
 0x1c3   : > { %v308_v34 = vpop.xlane.xlu0 %307 }
 0x1c4   : > { %v309_v35 = vrot.slane %v308_v34, 4 }
 0x1c6   : > { %v310_v36 = vadd.f32 %v309_v35, %v308_v34 }
 0x1c8   : > { %v311_v37 = vrot.slane %v310_v36, 2 }
 0x1ca   : > { %v312_v38 = vadd.f32 %v311_v37, %v310_v36 }
 0x1cc   : > { %v313_v39 = vrot.slane %v312_v38, 1 }
 0x1ce   : > { %v314_v40 = vadd.f32 %v313_v39, %v312_v38 }
 0x1d0   : > { %493 = vpush %v314_v40 }
 0x201   : > { %s494_s6 = spop %493 }
 0x202   : > { %v316_v41 = vstv %s494_s6 }
 0x203   : > { %318 = vst.msk [vmem:[%s204_s5] sm:$0x1] %vm317_vm2, %v316_v41 }
 0x204 PF: > { %s15_s14 = sadd.s32 1, %s635_s14   ;;  %s813_s9 = smov %s619_s10 }
 0x205   : > { %p12_p9 = scmp.ge.s32.totalorder %s15_s14, 4   ;;  %s814_s10 = smov %s623_s11 }
 0x206   : > { %s815_s11 = smov %s707_s21  ;;  %s816_s12 = smov %s631_s13 }
 0x207   : > { %s817_s13 = smov %s819_s16  ;;  %14 = sbr.rel (!%p12_p9) target bundleno = 4 (0x4), region = 79 }
 0x20e   :  { %336 = vsyncpa [#allocation4], 1 }
 0x20f   :  { %338 = vsyncpa [#allocation4 + $0x1], 1 }

</bundles_post_ra>
